<compile_context>
chip_gen: v7x
topology: tpu7x:2x2x1
jax: 0.10.0
libtpu: 0.0.40
codegen_flags: <defaults>
</compile_context>

<pallas_src>
import functools

import jax
import jax.numpy as jnp
from jax import lax
from jax.experimental import pallas as pl
from jax.experimental.pallas import tpu as pltpu


def _shifted(x, offset, length):
    """Cyclic shift along the last (lane) axis: out[..., j] = x[..., j+offset].

    Uses a non-negative pltpu.roll amount; the caller masks wrapped lanes.
    """
    return pltpu.roll(x, (-offset) % length, axis=x.ndim - 1)


def _crp_kernel(x_ref, w_ref, o_ref, *, n_stages, H, W, C):
    """One batch element per grid step.

    x_ref : (1, C, H*W)       input tile  (NCHW with H,W flattened onto lanes)
    w_ref : (n_stages, C, C)  per-stage 1x1-conv weights, PyTorch (Cout, Cin)
    o_ref : (1, C, H*W)       output tile / residual accumulator
    """
    HW = H * W
    neg_inf = jnp.float32(-jnp.inf)

    x = x_ref[0].astype(jnp.float32)              # (C, HW)

    # Residual accumulator lives in the output tile (in-place accumulation).
    o_ref[0] = x.astype(o_ref.dtype)

    # Boundary masks: loop-invariant, computed once and reused by all stages.
    pos = lax.broadcasted_iota(jnp.int32, (C, HW), 1)     # flat pixel index
    col = pos % W                                         # column within a row
    # Valid lanes when reading x[..., j + off] within the same image row.
    w_valid = {+1: col < W - 1, +2: col < W - 2,
               -1: col >= 1,    -2: col >= 2}
    # Valid lanes when reading row h + off (shift by off*W along flat axis).
    h_valid = {+1: pos < HW - W, +2: pos < HW - 2 * W,
               -1: pos >= W,     -2: pos >= 2 * W}

    top = x
    # n_stages is small and static -> unrolled Python loop.  (For many stages
    # switch to lax.fori_loop and index w_ref[i] dynamically, keeping the
    # accumulator in o_ref as done here.)
    for i in range(n_stages):
        # ---- separable 5x5 max pool, stride 1, padding 2 (pad = -inf) ----
        # pass 1: width-5 running max along W (lane rolls by +-1, +-2).
        pooled_w = top
        for off in (1, 2, -1, -2):
            cand = jnp.where(w_valid[off], _shifted(top, off, HW), neg_inf)
            pooled_w = jnp.maximum(pooled_w, cand)
        # pass 2: height-5 running max along H (lane rolls by +-W, +-2W).
        pooled = pooled_w
        for off in (1, 2, -1, -2):
            cand = jnp.where(h_valid[off],
                             _shifted(pooled_w, off * W, HW), neg_inf)
            pooled = jnp.maximum(pooled, cand)

        # ---- 1x1 conv (no bias): (Cout, Cin) @ (Cin, HW) on the MXU ----
        top = jnp.dot(w_ref[i].astype(jnp.float32), pooled,
                      preferred_element_type=jnp.float32)

        # ---- residual accumulate, in place in the output tile ----
        o_ref[0] = (o_ref[0].astype(jnp.float32) + top).astype(o_ref.dtype)


def crp_block_pallas(x_nchw, weights, n_stages):
    """x_nchw: (N, C, H, W) float32.  weights: (n_stages, Cout, Cin) (PyTorch
    Conv2d weight with the trailing 1x1 squeezed).  Returns (N, C, H, W)."""
    N, C, H, W = x_nchw.shape
    HW = H * W
    assert weights.shape == (n_stages, C, C)

    # NCHW-native lane-dense layout: collapse (H, W) onto the lane axis.
    # This is a free metadata reshape (contiguous dims), not a transpose.
    x_flat = x_nchw.reshape(N, C, HW)

    kernel = functools.partial(_crp_kernel, n_stages=n_stages, H=H, W=W, C=C)

    out_flat = pl.pallas_call(
        kernel,
        out_shape=jax.ShapeDtypeStruct((N, C, HW), x_nchw.dtype),
        grid_spec=pltpu.PrefetchScalarGridSpec(
            num_scalar_prefetch=0,
            grid=(N,),
            in_specs=[
                pl.BlockSpec((1, C, HW), lambda n: (n, 0, 0)),
                # Weights: constant block index -> stay resident in VMEM.
                pl.BlockSpec((n_stages, C, C), lambda n: (0, 0, 0)),
            ],
            out_specs=pl.BlockSpec((1, C, HW), lambda n: (n, 0, 0)),
        ),
        compiler_params=pltpu.CompilerParams(
            dimension_semantics=("parallel",),
            vmem_limit_bytes=32 * 1024 * 1024,
        ),
    )(x_flat, weights)

    return out_flat.reshape(N, C, H, W)


# ---------------- pure-JAX reference (for correctness check) ----------------
def crp_block_ref(x_nchw, weights, n_stages):
    x = x_nchw
    top = x_nchw
    for i in range(n_stages):
        # maxpool 5x5 / stride 1 / pad 2 over (H, W) of NCHW
        top = lax.reduce_window(
            top, -jnp.inf, lax.max,
            window_dimensions=(1, 1, 5, 5),
            window_strides=(1, 1, 1, 1),
            padding=((0, 0), (0, 0), (2, 2), (2, 2)))
        # 1x1 conv, no bias: y[n,co,h,w] = sum_ci w[co,ci] * top[n,ci,h,w]
        top = jnp.einsum('oc,nchw->nohw', weights[i], top)
        x = top + x
    return x


if __name__ == "__main__":
    N, C, H, W = 2, 4, 16, 16
    n_stages = 2

    key = jax.random.PRNGKey(0)
    kx, kw = jax.random.split(key)
    x = jax.random.normal(kx, (N, C, H, W), dtype=jnp.float32)
    # Conv2d(C, C, k=1, bias=False) weight has shape (C, C, 1, 1); squeeze -> (C, C)
    weights = 0.1 * jax.random.normal(kw, (n_stages, C, C), dtype=jnp.float32)

    out = crp_block_pallas(x, weights, n_stages)
    out = jax.block_until_ready(out)

    ref = crp_block_ref(x, weights, n_stages)
    assert out.shape == ref.shape == (N, C, H, W)
    assert jnp.allclose(out, ref, atol=1e-5, rtol=1e-5), "mismatch vs reference"

    print("KERNEL_OK")
</pallas_src>

<mosaic_0001>
module attributes {stable_mosaic.version = 11 : i64} {
  func.func @_crp_kernel(%arg0: i32, %arg1: memref<1x4x256xf32, #tpu.memory_space<vmem>>, %arg2: memref<2x4x4xf32, #tpu.memory_space<vmem>>, %arg3: memref<1x4x256xf32, #tpu.memory_space<vmem>>) attributes {dimension_semantics = [#tpu.dimension_semantics<parallel>], iteration_bounds = array<i64: 2>, scalar_prefetch = 0 : i64, scratch_operands = 0 : i64, tpu.core_type = #tpu.core_type<tc>, window_params = [{transform_indices = @transform_0, window_bounds = array<i64: 1, 4, 256>}, {pipeline_mode = #tpu.pipeline_mode<synchronous>, transform_indices = @transform_1, window_bounds = array<i64: 2, 4, 4>}, {transform_indices = @transform_2, window_bounds = array<i64: 1, 4, 256>}]} {
    %c0 = arith.constant 0 : index
    %c0_0 = arith.constant 0 : index
    %c0_1 = arith.constant 0 : index
    %0 = vector.load %arg1[%c0, %c0_0, %c0_1] : memref<1x4x256xf32, #tpu.memory_space<vmem>>, vector<1x4x256xf32>
    %1 = vector.shape_cast %0 : vector<1x4x256xf32> to vector<4x256xf32>
    %c0_2 = arith.constant 0 : index
    %c0_3 = arith.constant 0 : index
    %c0_4 = arith.constant 0 : index
    %2 = vector.load %arg3[%c0_2, %c0_3, %c0_4] : memref<1x4x256xf32, #tpu.memory_space<vmem>>, vector<1x4x256xf32>
    %3 = vector.shape_cast %2 : vector<1x4x256xf32> to vector<4x256xf32>
    %4 = vector.shape_cast %1 : vector<4x256xf32> to vector<1x4x256xf32>
    tpu.vector_store %arg3[%c0_2, %c0_3, %c0_4], %4 {strides = array<i32>} : memref<1x4x256xf32, #tpu.memory_space<vmem>>, vector<1x4x256xf32>,
    %5 = tpu.iota {dimensions = array<i32: 1>} : vector<4x256xi32>
    %c16_i32 = arith.constant 16 : i32
    %c0_i32 = arith.constant 0 : i32
    %6 = arith.cmpi eq, %c16_i32, %c0_i32 : i32
    %c1_i32 = arith.constant 1 : i32
    %7 = arith.select %6, %c1_i32, %c16_i32 : i32
    %8 = vector.broadcast %7 : i32 to vector<4x256xi32>
    %9 = arith.remsi %5, %8 : vector<4x256xi32>
    %c0_i32_5 = arith.constant 0 : i32
    %10 = vector.broadcast %c0_i32_5 : i32 to vector<4x256xi32>
    %11 = arith.cmpi ne, %9, %10 : vector<4x256xi32>
    %c0_i32_6 = arith.constant 0 : i32
    %12 = vector.broadcast %c0_i32_6 : i32 to vector<4x256xi32>
    %13 = arith.cmpi slt, %9, %12 : vector<4x256xi32>
    %c0_i32_7 = arith.constant 0 : i32
    %14 = arith.cmpi slt, %7, %c0_i32_7 : i32
    %15 = vector.broadcast %14 : i1 to vector<4x256xi1>
    %16 = vector.broadcast %15 : vector<4x256xi1> to vector<4x256xi1>
    %17 = arith.xori %13, %16 : vector<4x256xi1>
    %18 = arith.andi %17, %11 : vector<4x256xi1>
    %19 = vector.broadcast %7 : i32 to vector<4x256xi32>
    %20 = arith.addi %9, %19 : vector<4x256xi32>
    %21 = arith.select %18, %20, %9 : vector<4x256xi1>, vector<4x256xi32>
    %c15_i32 = arith.constant 15 : i32
    %22 = vector.broadcast %c15_i32 : i32 to vector<4x256xi32>
    %23 = arith.cmpi slt, %21, %22 : vector<4x256xi32>
    %c14_i32 = arith.constant 14 : i32
    %24 = vector.broadcast %c14_i32 : i32 to vector<4x256xi32>
    %25 = arith.cmpi slt, %21, %24 : vector<4x256xi32>
    %c1_i32_8 = arith.constant 1 : i32
    %26 = vector.broadcast %c1_i32_8 : i32 to vector<4x256xi32>
    %27 = arith.cmpi sge, %21, %26 : vector<4x256xi32>
    %c2_i32 = arith.constant 2 : i32
    %28 = vector.broadcast %c2_i32 : i32 to vector<4x256xi32>
    %29 = arith.cmpi sge, %21, %28 : vector<4x256xi32>
    %c240_i32 = arith.constant 240 : i32
    %30 = vector.broadcast %c240_i32 : i32 to vector<4x256xi32>
    %31 = arith.cmpi slt, %5, %30 : vector<4x256xi32>
    %c224_i32 = arith.constant 224 : i32
    %32 = vector.broadcast %c224_i32 : i32 to vector<4x256xi32>
    %33 = arith.cmpi slt, %5, %32 : vector<4x256xi32>
    %c16_i32_9 = arith.constant 16 : i32
    %34 = vector.broadcast %c16_i32_9 : i32 to vector<4x256xi32>
    %35 = arith.cmpi sge, %5, %34 : vector<4x256xi32>
    %c32_i32 = arith.constant 32 : i32
    %36 = vector.broadcast %c32_i32 : i32 to vector<4x256xi32>
    %37 = arith.cmpi sge, %5, %36 : vector<4x256xi32>
    %c255_i32 = arith.constant 255 : i32
    %38 = tpu.dynamic_rotate %1 by %c255_i32 dim 1 : vector<4x256xf32>, i32 -> vector<4x256xf32>
    %cst = arith.constant 0xFF800000 : f32
    %39 = vector.broadcast %cst : f32 to vector<4x256xf32>
    %40 = arith.select %23, %38, %39 : vector<4x256xi1>, vector<4x256xf32>
    %41 = arith.maximumf %1, %40 : vector<4x256xf32>
    %c254_i32 = arith.constant 254 : i32
    %42 = tpu.dynamic_rotate %1 by %c254_i32 dim 1 : vector<4x256xf32>, i32 -> vector<4x256xf32>
    %cst_10 = arith.constant 0xFF800000 : f32
    %43 = vector.broadcast %cst_10 : f32 to vector<4x256xf32>
    %44 = arith.select %25, %42, %43 : vector<4x256xi1>, vector<4x256xf32>
    %45 = arith.maximumf %41, %44 : vector<4x256xf32>
    %c1_i32_11 = arith.constant 1 : i32
    %46 = tpu.dynamic_rotate %1 by %c1_i32_11 dim 1 : vector<4x256xf32>, i32 -> vector<4x256xf32>
    %cst_12 = arith.constant 0xFF800000 : f32
    %47 = vector.broadcast %cst_12 : f32 to vector<4x256xf32>
    %48 = arith.select %27, %46, %47 : vector<4x256xi1>, vector<4x256xf32>
    %49 = arith.maximumf %45, %48 : vector<4x256xf32>
    %c2_i32_13 = arith.constant 2 : i32
    %50 = tpu.dynamic_rotate %1 by %c2_i32_13 dim 1 : vector<4x256xf32>, i32 -> vector<4x256xf32>
    %cst_14 = arith.constant 0xFF800000 : f32
    %51 = vector.broadcast %cst_14 : f32 to vector<4x256xf32>
    %52 = arith.select %29, %50, %51 : vector<4x256xi1>, vector<4x256xf32>
    %53 = arith.maximumf %49, %52 : vector<4x256xf32>
    %c240_i32_15 = arith.constant 240 : i32
    %54 = tpu.dynamic_rotate %53 by %c240_i32_15 dim 1 : vector<4x256xf32>, i32 -> vector<4x256xf32>
    %cst_16 = arith.constant 0xFF800000 : f32
    %55 = vector.broadcast %cst_16 : f32 to vector<4x256xf32>
    %56 = arith.select %31, %54, %55 : vector<4x256xi1>, vector<4x256xf32>
    %57 = arith.maximumf %53, %56 : vector<4x256xf32>
    %c224_i32_17 = arith.constant 224 : i32
    %58 = tpu.dynamic_rotate %53 by %c224_i32_17 dim 1 : vector<4x256xf32>, i32 -> vector<4x256xf32>
    %cst_18 = arith.constant 0xFF800000 : f32
    %59 = vector.broadcast %cst_18 : f32 to vector<4x256xf32>
    %60 = arith.select %33, %58, %59 : vector<4x256xi1>, vector<4x256xf32>
    %61 = arith.maximumf %57, %60 : vector<4x256xf32>
    %c16_i32_19 = arith.constant 16 : i32
    %62 = tpu.dynamic_rotate %53 by %c16_i32_19 dim 1 : vector<4x256xf32>, i32 -> vector<4x256xf32>
    %cst_20 = arith.constant 0xFF800000 : f32
    %63 = vector.broadcast %cst_20 : f32 to vector<4x256xf32>
    %64 = arith.select %35, %62, %63 : vector<4x256xi1>, vector<4x256xf32>
    %65 = arith.maximumf %61, %64 : vector<4x256xf32>
    %c32_i32_21 = arith.constant 32 : i32
    %66 = tpu.dynamic_rotate %53 by %c32_i32_21 dim 1 : vector<4x256xf32>, i32 -> vector<4x256xf32>
    %cst_22 = arith.constant 0xFF800000 : f32
    %67 = vector.broadcast %cst_22 : f32 to vector<4x256xf32>
    %68 = arith.select %37, %66, %67 : vector<4x256xi1>, vector<4x256xf32>
    %69 = arith.maximumf %65, %68 : vector<4x256xf32>
    %c0_23 = arith.constant 0 : index
    %c0_24 = arith.constant 0 : index
    %c0_25 = arith.constant 0 : index
    %70 = vector.load %arg2[%c0_23, %c0_24, %c0_25] : memref<2x4x4xf32, #tpu.memory_space<vmem>>, vector<1x4x4xf32>
    %71 = vector.shape_cast %70 : vector<1x4x4xf32> to vector<4x4xf32>
    %cst_26 = arith.constant dense<0.000000e+00> : vector<4x256xf32>
    %72 = tpu.matmul %71, %69, %cst_26 {dimension_numbers = #tpu.dot_dimension_numbers<[1], [0], [0], [1], [0, 0, 1, 1], [], []>} : vector<4x4xf32>, vector<4x256xf32>, vector<4x256xf32> -> vector<4x256xf32>
    %c0_27 = arith.constant 0 : index
    %c0_28 = arith.constant 0 : index
    %c0_29 = arith.constant 0 : index
    %73 = vector.load %arg3[%c0_27, %c0_28, %c0_29] : memref<1x4x256xf32, #tpu.memory_space<vmem>>, vector<1x4x256xf32>
    %74 = vector.shape_cast %73 : vector<1x4x256xf32> to vector<4x256xf32>
    %75 = arith.addf %74, %72 : vector<4x256xf32>
    %c0_30 = arith.constant 0 : index
    %c0_31 = arith.constant 0 : index
    %c0_32 = arith.constant 0 : index
    %76 = vector.load %arg3[%c0_30, %c0_31, %c0_32] : memref<1x4x256xf32, #tpu.memory_space<vmem>>, vector<1x4x256xf32>
    %77 = vector.shape_cast %76 : vector<1x4x256xf32> to vector<4x256xf32>
    %78 = vector.shape_cast %75 : vector<4x256xf32> to vector<1x4x256xf32>
    tpu.vector_store %arg3[%c0_30, %c0_31, %c0_32], %78 {strides = array<i32>} : memref<1x4x256xf32, #tpu.memory_space<vmem>>, vector<1x4x256xf32>,
    %c255_i32_33 = arith.constant 255 : i32
    %79 = tpu.dynamic_rotate %72 by %c255_i32_33 dim 1 : vector<4x256xf32>, i32 -> vector<4x256xf32>
    %cst_34 = arith.constant 0xFF800000 : f32
    %80 = vector.broadcast %cst_34 : f32 to vector<4x256xf32>
    %81 = arith.select %23, %79, %80 : vector<4x256xi1>, vector<4x256xf32>
    %82 = arith.maximumf %72, %81 : vector<4x256xf32>
    %c254_i32_35 = arith.constant 254 : i32
    %83 = tpu.dynamic_rotate %72 by %c254_i32_35 dim 1 : vector<4x256xf32>, i32 -> vector<4x256xf32>
    %cst_36 = arith.constant 0xFF800000 : f32
    %84 = vector.broadcast %cst_36 : f32 to vector<4x256xf32>
    %85 = arith.select %25, %83, %84 : vector<4x256xi1>, vector<4x256xf32>
    %86 = arith.maximumf %82, %85 : vector<4x256xf32>
    %c1_i32_37 = arith.constant 1 : i32
    %87 = tpu.dynamic_rotate %72 by %c1_i32_37 dim 1 : vector<4x256xf32>, i32 -> vector<4x256xf32>
    %cst_38 = arith.constant 0xFF800000 : f32
    %88 = vector.broadcast %cst_38 : f32 to vector<4x256xf32>
    %89 = arith.select %27, %87, %88 : vector<4x256xi1>, vector<4x256xf32>
    %90 = arith.maximumf %86, %89 : vector<4x256xf32>
    %c2_i32_39 = arith.constant 2 : i32
    %91 = tpu.dynamic_rotate %72 by %c2_i32_39 dim 1 : vector<4x256xf32>, i32 -> vector<4x256xf32>
    %cst_40 = arith.constant 0xFF800000 : f32
    %92 = vector.broadcast %cst_40 : f32 to vector<4x256xf32>
    %93 = arith.select %29, %91, %92 : vector<4x256xi1>, vector<4x256xf32>
    %94 = arith.maximumf %90, %93 : vector<4x256xf32>
    %c240_i32_41 = arith.constant 240 : i32
    %95 = tpu.dynamic_rotate %94 by %c240_i32_41 dim 1 : vector<4x256xf32>, i32 -> vector<4x256xf32>
    %cst_42 = arith.constant 0xFF800000 : f32
    %96 = vector.broadcast %cst_42 : f32 to vector<4x256xf32>
    %97 = arith.select %31, %95, %96 : vector<4x256xi1>, vector<4x256xf32>
    %98 = arith.maximumf %94, %97 : vector<4x256xf32>
    %c224_i32_43 = arith.constant 224 : i32
    %99 = tpu.dynamic_rotate %94 by %c224_i32_43 dim 1 : vector<4x256xf32>, i32 -> vector<4x256xf32>
    %cst_44 = arith.constant 0xFF800000 : f32
    %100 = vector.broadcast %cst_44 : f32 to vector<4x256xf32>
    %101 = arith.select %33, %99, %100 : vector<4x256xi1>, vector<4x256xf32>
    %102 = arith.maximumf %98, %101 : vector<4x256xf32>
    %c16_i32_45 = arith.constant 16 : i32
    %103 = tpu.dynamic_rotate %94 by %c16_i32_45 dim 1 : vector<4x256xf32>, i32 -> vector<4x256xf32>
    %cst_46 = arith.constant 0xFF800000 : f32
    %104 = vector.broadcast %cst_46 : f32 to vector<4x256xf32>
    %105 = arith.select %35, %103, %104 : vector<4x256xi1>, vector<4x256xf32>
    %106 = arith.maximumf %102, %105 : vector<4x256xf32>
    %c32_i32_47 = arith.constant 32 : i32
    %107 = tpu.dynamic_rotate %94 by %c32_i32_47 dim 1 : vector<4x256xf32>, i32 -> vector<4x256xf32>
    %cst_48 = arith.constant 0xFF800000 : f32
    %108 = vector.broadcast %cst_48 : f32 to vector<4x256xf32>
    %109 = arith.select %37, %107, %108 : vector<4x256xi1>, vector<4x256xf32>
    %110 = arith.maximumf %106, %109 : vector<4x256xf32>
    %c1 = arith.constant 1 : index
    %c0_49 = arith.constant 0 : index
    %c0_50 = arith.constant 0 : index
    %111 = vector.load %arg2[%c1, %c0_49, %c0_50] : memref<2x4x4xf32, #tpu.memory_space<vmem>>, vector<1x4x4xf32>
    %112 = vector.shape_cast %111 : vector<1x4x4xf32> to vector<4x4xf32>
    %cst_51 = arith.constant dense<0.000000e+00> : vector<4x256xf32>
    %113 = tpu.matmul %112, %110, %cst_51 {dimension_numbers = #tpu.dot_dimension_numbers<[1], [0], [0], [1], [0, 0, 1, 1], [], []>} : vector<4x4xf32>, vector<4x256xf32>, vector<4x256xf32> -> vector<4x256xf32>
    %c0_52 = arith.constant 0 : index
    %c0_53 = arith.constant 0 : index
    %c0_54 = arith.constant 0 : index
    %114 = vector.load %arg3[%c0_52, %c0_53, %c0_54] : memref<1x4x256xf32, #tpu.memory_space<vmem>>, vector<1x4x256xf32>
    %115 = vector.shape_cast %114 : vector<1x4x256xf32> to vector<4x256xf32>
    %116 = arith.addf %115, %113 : vector<4x256xf32>
    %c0_55 = arith.constant 0 : index
    %c0_56 = arith.constant 0 : index
    %c0_57 = arith.constant 0 : index
    %117 = vector.load %arg3[%c0_55, %c0_56, %c0_57] : memref<1x4x256xf32, #tpu.memory_space<vmem>>, vector<1x4x256xf32>
    %118 = vector.shape_cast %117 : vector<1x4x256xf32> to vector<4x256xf32>
    %119 = vector.shape_cast %116 : vector<4x256xf32> to vector<1x4x256xf32>
    tpu.vector_store %arg3[%c0_55, %c0_56, %c0_57], %119 {strides = array<i32>} : memref<1x4x256xf32, #tpu.memory_space<vmem>>, vector<1x4x256xf32>,
    return
  }
  func.func @transform_0(%arg0: i32) -> (i32, i32, i32) {
    %c0_i32 = arith.constant 0 : i32
    %c0_i32_0 = arith.constant 0 : i32
    %c0_i32_1 = arith.constant 0 : i32
    return %arg0, %c0_i32, %c0_i32_0 : i32, i32, i32
  }
  func.func @transform_1(%arg0: i32) -> (i32, i32, i32) {
    %c0_i32 = arith.constant 0 : i32
    %c0_i32_0 = arith.constant 0 : i32
    %c0_i32_1 = arith.constant 0 : i32
    %c0_i32_2 = arith.constant 0 : i32
    return %c0_i32, %c0_i32_0, %c0_i32_1 : i32, i32, i32
  }
  func.func @transform_2(%arg0: i32) -> (i32, i32, i32) {
    %c0_i32 = arith.constant 0 : i32
    %c0_i32_0 = arith.constant 0 : i32
    %c0_i32_1 = arith.constant 0 : i32
    return %arg0, %c0_i32, %c0_i32_0 : i32, i32, i32
  }
}

</mosaic_0001>

<bundles_post_ra>
// kernel: tpu_custom_call.1
= control target key start
LH: loop header
LB: loop body
LE: loop exit
PB: predicated region body
PF: predicated region fallthrough
CT: control target
= control target key end

     0   :  { %7 = vsyncpa [#allocation3], 0  ;;  %s1354_s0 = inlined_call_operand.hbm [shape: f32[2,4,256], index: 0, kind: input, shape index: {}]   ;;  %s1355_s1 = inlined_call_operand.hbm [shape: f32[2,4,4], index: 1, kind: input, shape index: {}]   ;;  %s1356_s2 = inlined_call_operand.hbm [shape: f32[2,4,256], index: 2, kind: output, shape index: {}]  }
   0x1   :  { %9 = vsyncpa [#allocation3 + $0x1], 0 }
   0x2   :  { %10 = vsyncpa [#allocation6], 0 }
   0x3   :  { %11 = vsyncpa [#allocation4], 0 }
   0x4   :  { %13 = vsyncpa [#allocation4 + $0x1], 0  ;;  %s944_s9 = smov 0   ;;  %s946_s10 = smov 0  }
   0x5   :  { %s948_s11 = smov 0   ;;  %s950_s12 = smov 0  }
   0x6 LB: > { %s965_s13 = sadd.s32 4294967295, %s913_s12   ;;  %s692_s14 = sadd.s32 4294967294, %s913_s12   ;;  %s913_s12 = sphi %s950_s12, %s1390_s12   ;;  %s909_s11 = sphi %s948_s11, %s1389_s11   ;;  %s905_s10 = sphi %s946_s10, %s1388_s10   ;;  %s901_s9 = sphi %s944_s9, %s1387_s9  }
   0x7   : > { %p39_p0 = scmp.ne.s32.totalorder %s905_s10, %s901_s9  ;;  %p1357_p1 = scmp.eq.s32.totalorder %s965_s13, 0 }
   0x8   : > { %p90_p3 = scmp.eq.s32.totalorder %s692_s14, 1  ;;  %p693_p5 = scmp.ge.s32.totalorder %s913_s12, 1 }
   0x9   : > { %p974_p4 = por %p1357_p1, %p39_p0  ;;  %p97_p7 = scmp.lt.s32.totalorder %s913_s12, 3 }
   0xa   : > { %p979_p6 = por %p90_p3, %p39_p0  ;;  %s915_s18 = smov [#allocation5]  }
   0xb   : > { %s1366_s15 = scalar_select %p974_p4, 1, 0 }
   0xc   : > { %s1367_s16 = scalar_select %p979_p6, 1, 0 }
   0xd   : > { %p984_p8 = pnand %p693_p5, %p97_p7  ;;  %s109_s19 = sshll.u32 %s915_s18, 4  ;;  %s988_s19 = int_to_ptr.vmem [resolvable:$true] %s109_s19 }
   0xe   : > { %s1000_s21 = sadd.s32 1, %s913_s12   ;;  %s26_s22 = sadd.s32 1, %s909_s11 }
   0xf   : > { %s1368_s17 = scalar_select %p984_p8, 1, 0 }
  0x10   : > { %p724_p9 = pneg %p984_p8  ;;  %s23_s23 = ssub.s32 %s913_s12, %s1000_s21 }
  0x11   : > { %s785_s26 = scalar_lea.hbm %s1355_s1, 128 }
  0x12   : > { %p995_p11 = pnand %p724_p9, %p1357_p1  ;;  %p786_p12 = scmp.ne.s32.totalorder %s1355_s1, %s785_s26 }
  0x13   : > { %p792_p5 = scmp.lt.u32.totalorder %s785_s26, %s1355_s1 }
  0x14   : > { %p787_p13 = pneg %p995_p11 }
  0x16   : > { %p788_p0 = pnand %p787_p13, %p786_p12 }
  0x18   : > { %p789_p3 = pneg %p788_p0 }
  0x1a   : > { %p794_p7 = pnand %p792_p5, %p789_p3 }
  0x1c   : > { %797 = shalt.err (!%p794_p7)
}
  0x1d   : > { %s798_s3 = scalar_lea.vmem %s988_s19, 128  ;;  %p806_p2 = scmp.lt.s32.totalorder %s988_s19, %s988_s19 }
  0x1e   : > { %p799_p9 = scmp.ne.s32.totalorder %s988_s19, %s798_s3  ;;  %p807_p6 = scmp.lt.s32.totalorder %s798_s3, %s798_s3 }
  0x20   : > { %p801_p10 = pnand %p799_p9, %p787_p13  ;;  %p808_p4 = por %p807_p6, %p806_p2 }
  0x22   : > { %p802_p1 = pneg %p801_p10 }
  0x24   : > { %p809_p8 = pnand %p808_p4, %p802_p1 }
  0x26   : > { %812 = shalt.err (!%p809_p8)
}
  0x27   : > { %s916_s4 = smov 64   ;;  %s917_s5 = smov 4  }
  0x28   : > { %727 = dma.hbm_to_vmem [thread:$0]  (!%p995_p11), %s1355_s1, 128, %s988_s19, [#allocation6], %s916_s4, %s916_s4, %s917_s5  }
  0x29   : > { %p24_p2 = scmp.eq.s32.totalorder %s23_s23, 0  ;;  %p33_p1 = scmp.ne.s32.totalorder %s909_s11, %s905_s10 }
  0x2a   : > { %p34_p4 = scmp.eq.s32.totalorder %s913_s12, 0  ;;  %p737_p6 = scmp.lt.s32.totalorder %s913_s12, 2 }
  0x2b   : > { %s1031_s8 = scalar_select %p24_p2, %s909_s11, %s26_s22  }
  0x2c   : > { %p35_p8 = por %p34_p4, %p33_p1  ;;  %p1370_p10 = scmp.eq.s32.totalorder %s965_s13, 1 }
  0x2d   : > { %s123_s18 = sand.u32 1, %s909_s11   ;;  %s714_s24 = sshll.u32 %s913_s12, 7 }
  0x2e   : > { %p1035_p12 = por %p1370_p10, %p33_p1  ;;  %s696_s25 = sshll.u32 %s123_s18, 3 }
  0x2f   : > { %s1044_s27 = scalar_lea.hbm %s1354_s0, %s714_s24  ;;  %s127_s19 = scalar_lea.vmem [#allocation2], %s696_s25 }
  0x30   : > { %s135_s22 = sshll.u32 %s127_s19, 4  ;;  %p1046_p11 = pnand %p737_p6, %p35_p8  ;;  %s1050_s22 = int_to_ptr.vmem [resolvable:$true] %s135_s22 }
  0x31   : > { %s124_s28 = scalar_lea.sflag [#allocation3], %s123_s18  ;;  %s813_s29 = scalar_lea.hbm %s1044_s27, 128 }
  0x32   : > { %p814_p13 = scmp.ne.s32.totalorder %s1044_s27, %s813_s29  ;;  %p815_p0 = pneg %p1046_p11 }
  0x33   : > { %s818_s4 = scalar_lea.hbm %s1354_s0, 256  ;;  %p819_p7 = scmp.lt.u32.totalorder %s1044_s27, %s1354_s0 }
  0x34   : > { %p816_p3 = pnand %p815_p0, %p814_p13  ;;  %p820_p9 = scmp.lt.u32.totalorder %s818_s4, %s813_s29 }
  0x35   : > { %p822_p1 = scmp.lt.u32.totalorder %s813_s29, %s1044_s27 }
  0x36   : > { %p817_p5 = pneg %p816_p3  ;;  %p821_p2 = por %p820_p9, %p819_p7 }
  0x38   : > { %p823_p4 = por %p822_p1, %p821_p2 }
  0x3a   : > { %p824_p6 = pnand %p823_p4, %p817_p5 }
  0x3c   : > { %827 = shalt.err (!%p824_p6)
}
  0x3d   : > { %s828_s7 = scalar_lea.vmem %s1050_s22, 128  ;;  %s918_s18 = smov [#allocation2]  }
  0x3e   : > { %p829_p8 = scmp.ne.s32.totalorder %s1050_s22, %s828_s7  ;;  %s833_s24 = sshll.u32 %s918_s18, 4  ;;  %s834_s24 = int_to_ptr.vmem [resolvable:$false] %s833_s24 }
  0x3f   : > { %s835_s25 = scalar_lea.vmem %s834_s24, 256  ;;  %p836_p3 = scmp.lt.s32.totalorder %s1050_s22, %s834_s24 }
  0x40   : > { %p831_p10 = pnand %p829_p8, %p815_p0  ;;  %p837_p7 = scmp.lt.s32.totalorder %s835_s25, %s828_s7 }
  0x42   : > { %p832_p13 = pneg %p831_p10  ;;  %p838_p9 = por %p837_p7, %p836_p3 }
  0x44   : > { %p839_p2 = pnand %p838_p9, %p832_p13 }
  0x46   : > { %842 = shalt.err (!%p839_p2)
}
  0x47   : > { %731 = dma.hbm_to_vmem [thread:$0]  (!%p1046_p11), %s1044_s27, 128, %s1050_s22, %s124_s28  }
  0x48   : > { %p1373_p5 = scmp.ne.s32.totalorder %s1368_s17, 0 }
  0x49   : > { %s1080_s20 = sand.u32 (!%p1373_p5), 1, %s905_s10   ;;  %p1374_p0 = scmp.ne.s32.totalorder (!%p1373_p5), %s1366_s15, 0 }
  0x4a   : > { %144 = sbr.rel (%p1373_p5) target bundleno = 1065 (0x429), region = 28  ;;  %s700_s26 = sshll.u32 (!%p1373_p5), %s1080_s20, 3 }
  0x4b   : > { %s147_s19 = scalar_lea.sflag (!%p1373_p5), [#allocation3], %s1080_s20  ;;  %s150_s29 = scalar_lea.vmem (!%p1373_p5), [#allocation2], %s700_s26 }
  0x51   : > { %888 = dma.done.wait (%p1374_p0), %s147_s19, 128  }
  0x52   : > { %890 = vsyncadd (%p1374_p0), %s147_s19, 4294967168  ;;  %p1375_p11 = scmp.eq.s32.totalorder %s965_s13, 0 }
  0x54   : > { %892 = dma.done.wait (%p1375_p11), [#allocation6], 128   ;;  %p1376_p1 = pmov %p1375_p11 }
  0x55   : > { %v1094_v0 = vld [vmem:[%s150_s29] sm:$0xff]  ;;  %s919_s17 = smov 126   ;;  %s920_s27 = smov 127   ;;  %v177_v2 = vlaneseq  ;;  %v926_v40 = vmov 0.0  }
  0x56   : > { %894 = vsyncadd (%p1376_p1), [#allocation6], 4294967168  ;;  %237 = vrot.lane.b32.xlu1 %v1094_v0, %s919_s17  ;;  %223 = vrot.lane.b32.xlu0 %v1094_v0, %s920_s27  ;;  %v221_v1 = vcombine.high %v1094_v0, %v1094_v0  ;;  %s921_s15 = smov 1   ;;  %s922_s22 = smov 2  }
  0x57   : > { %v1110_v3 = vand.u32 127, %v177_v2  ;;  %s923_s23 = smov 112   ;;  %s924_s28 = smov 96   ;;  %414 = vmatprep.mubr.f32.mxu0 %v926_v40  ;;  %583 = vmatprep.mubr.f32.mxu1 %v926_v40 }
  0x58   : > { %s925_s30 = smov 16   ;;  %s927_s3 = smov 32  }
  0x59   : > { %v1113_v4 = vadd.s32 128, %v1110_v3  ;;  %v1116_v5 = vand.u32 15, %v1110_v3  ;;  %vm241_vm0 = vcmp.lt.s32.totalorder %v1110_v3, 126  ;;  %vm227_vm1 = vcmp.lt.s32.totalorder %v1110_v3, 127  ;;  %s715_s4 = sshll.u32 %s965_s13, 7  ;;  %s174_s5 = scalar_lea.vmem [#allocation7], %s700_s26 }
  0x5a   : > { %239 = vrot.lane.b32.xlu1 %v221_v1, %s919_s17  ;;  %225 = vrot.lane.b32.xlu0 %v221_v1, %s920_s27  ;;  %vm255_vm6 = vcmp.lt.s32.totalorder %v1110_v3, 1  ;;  %vm269_vm9 = vcmp.lt.s32.totalorder %v1110_v3, 2  ;;  %vm286_vm12 = vcmp.lt.s32.totalorder %v1110_v3, 112  ;;  %vm1362_vm14 = vcmp.lt.s32.totalorder %v1110_v3, 96  ;;  %s612_s6 = sshll.u32 %s174_s5, 4  ;;  %s1310_s24 = scalar_lea.hbm %s1356_s2, %s715_s4  ;;  %s1312_s6 = int_to_ptr.vmem [resolvable:$true] %s612_s6 }
  0x5b   : > { %v1119_v6 = vand.u32 15, %v1113_v4  ;;  %vm206_vm2 = vcmp.lt.s32.totalorder %v1116_v5, 14  ;;  %vm204_vm4 = vcmp.lt.s32.totalorder %v1116_v5, 15  ;;  %vm208_vm7 = vcmp.ge.s32.totalorder %v1116_v5, 1  ;;  %s598_s13 = scalar_lea.sflag [#allocation4], %s1080_s20  ;;  %s843_s25 = scalar_lea.vmem %s1312_s6, 128 }
  0x5c   : > { %vm1361_vm10 = vcmp.ge.s32.totalorder %v1116_v5, 2  ;;  %vm213_vm13 = vcmp.lt.s32.totalorder %v1113_v4, 240  ;;  %vm1363_vm15 = vcmp.lt.s32.totalorder %v1113_v4, 224  ;;  %p844_p4 = scmp.ne.s32.totalorder %s1312_s6, %s843_s25  ;;  %s928_s26 = smov [#allocation7]  }
  0x5d   : > { %vm207_vm3 = vcmp.lt.s32.totalorder %v1119_v6, 14  ;;  %vm205_vm5 = vcmp.lt.s32.totalorder %v1119_v6, 15  ;;  %vm209_vm8 = vcmp.ge.s32.totalorder %v1119_v6, 1  ;;  %vm1360_vm11 = vcmp.ge.s32.totalorder %v1119_v6, 2  ;;  %s847_s19 = sshll.u32 %s928_s26, 4  ;;  %s848_s19 = int_to_ptr.vmem [resolvable:$false] %s847_s19 }
  0x5e   : > { %253 = vrot.lane.b32.xlu1 %v221_v1, %s921_s15  ;;  %251 = vrot.lane.b32.xlu0 %v1094_v0, %s921_s15  ;;  %p845_p6 = pnand %p844_p4, %p1035_p12  ;;  %s849_s29 = scalar_lea.vmem %s848_s19, 256 }
  0x5f   : > { %p850_p10 = scmp.lt.s32.totalorder %s1312_s6, %s848_s19  ;;  %p851_p13 = scmp.lt.s32.totalorder %s849_s29, %s843_s25 }
  0x60   : > { %p846_p8 = pneg %p845_p6 }
  0x61   : > { %p852_p3 = por %p851_p13, %p850_p10 }
  0x62   : > { %267 = vrot.lane.b32.xlu1 %v221_v1, %s922_s22  ;;  %265 = vrot.lane.b32.xlu0 %v1094_v0, %s922_s22 }
  0x63   : > { %p853_p7 = pnand %p852_p3, %p846_p8 }
  0xc8   : > { %v238_v7 = vpop.permute.xlu1 %237  ;;  %v224_v8 = vpop.permute.xlu0 %223 }
  0xcc   : > { %v240_v9 = vpop.permute.xlu1 %239  ;;  %v226_v10 = vpop.permute.xlu0 %225 }
  0xcd   : > { %v242_v11 = vsel %vm241_vm0, %v238_v7, %v240_v9  ;;  %v243_v12 = vsel %vm241_vm0, %v240_v9, %v238_v7  ;;  %v228_v13 = vsel %vm227_vm1, %v224_v8, %v226_v10  ;;  %v229_v14 = vsel %vm227_vm1, %v226_v10, %v224_v8 }
  0xce   : > { %v244_v15 = vsel %vm206_vm2, %v242_v11, -inf  ;;  %v245_v16 = vsel %vm207_vm3, %v243_v12, -inf  ;;  %v230_v17 = vsel %vm204_vm4, %v228_v13, -inf  ;;  %v231_v18 = vsel %vm205_vm5, %v229_v14, -inf  ;;  %v338_v11 = vld [vmem:[#allocation5] sm:$0xf] }
  0xcf   : > { %v234_v19 = vcombine.low %v230_v17, %v231_v18  ;;  %v248_v22 = vcombine.low %v244_v15, %v245_v16 }
  0xd0   : > { %v254_v20 = vpop.permute.xlu1 %253  ;;  %v252_v21 = vpop.permute.xlu0 %251 }
  0xd1   : > { %v236_v23 = vmax.f32 %v1094_v0, %v234_v19  ;;  %v256_v24 = vsel %vm255_vm6, %v252_v21, %v254_v20  ;;  %v257_v25 = vsel %vm255_vm6, %v254_v20, %v252_v21 }
  0xd2   : > { %v258_v26 = vsel %vm208_vm7, %v257_v25, -inf  ;;  %v259_v27 = vsel %vm209_vm8, %v256_v24, -inf }
  0xd3   : > { %v250_v28 = vmax.f32 %v236_v23, %v248_v22  ;;  %v262_v29 = vcombine.low %v258_v26, %v259_v27 }
  0xd4   : > { %v268_v30 = vpop.permute.xlu1 %267  ;;  %v266_v31 = vpop.permute.xlu0 %265 }
  0xd5   : > { %v270_v32 = vsel %vm269_vm9, %v266_v31, %v268_v30  ;;  %v271_v33 = vsel %vm269_vm9, %v268_v30, %v266_v31  ;;  %v264_v36 = vmax.f32 %v250_v28, %v262_v29 }
  0xd6   : > { %v272_v34 = vsel %vm1361_vm10, %v271_v33, -inf  ;;  %v273_v35 = vsel %vm1360_vm11, %v270_v32, -inf  ;;  %vm1365_vm11 = vcmp.lt.s32.totalorder %v1110_v3, 16  ;;  %vm1364_vm10 = vcmp.ge.s32.totalorder %v1110_v3, 16 }
  0xd7   : > { %v276_v37 = vcombine.low %v272_v34, %v273_v35 }
  0xd9   : > { %v278_v38 = vmax.f32 %v264_v36, %v276_v37 }
  0xdb   : > { %282 = vrot.lane.b32.xlu0 %v278_v38, %s923_s23  ;;  %v280_v39 = vcombine.high %v278_v38, %v278_v38 }
  0xdd   : > { %284 = vrot.lane.b32.xlu1 %v280_v39, %s923_s23 }
  0xdf   : > { %296 = vrot.lane.b32.xlu0 %v278_v38, %s924_s28 }
  0xe1   : > { %298 = vrot.lane.b32.xlu1 %v280_v39, %s924_s28 }
  0xe3   : > { %310 = vrot.lane.b32.xlu0 %v278_v38, %s925_s30 }
  0xe5   : > { %312 = vrot.lane.b32.xlu1 %v280_v39, %s925_s30 }
  0xe7   : > { %324 = vrot.lane.b32.xlu0 %v278_v38, %s927_s3 }
  0xe9   : > { %326 = vrot.lane.b32.xlu1 %v280_v39, %s927_s3 }
 0x14d   : > { %v283_v41 = vpop.permute.xlu0 %282 }
 0x14f   : > { %v285_v42 = vpop.permute.xlu1 %284 }
 0x150   : > { %v288_v43 = vsel %vm286_vm12, %v285_v42, %v283_v41  ;;  %v287_v45 = vsel %vm286_vm12, %v283_v41, %v285_v42 }
 0x151   : > { %v297_v44 = vpop.permute.xlu0 %296  ;;  %v290_v46 = vsel %vm213_vm13, %v288_v43, -inf }
 0x152   : > { %v293_v52 = vcombine.low %v287_v45, %v290_v46 }
 0x153   : > { %v299_v47 = vpop.permute.xlu1 %298 }
 0x154   : > { %v302_v48 = vsel %vm1362_vm14, %v299_v47, %v297_v44  ;;  %v301_v49 = vsel %vm1362_vm14, %v297_v44, %v299_v47  ;;  %vm328_vm14 = vcmp.lt.s32.totalorder %v1110_v3, 32  ;;  %v295_v58 = vmax.f32 %v278_v38, %v293_v52 }
 0x155   : > { %v304_v50 = vsel %vm1363_vm15, %v302_v48, -inf  ;;  %v311_v51 = vpop.permute.xlu0 %310  ;;  %vm218_vm15 = vcmp.ge.s32.totalorder %v1110_v3, 32 }
 0x156   : > { %v307_v54 = vcombine.low %v301_v49, %v304_v50 }
 0x157   : > { %v313_v53 = vpop.permute.xlu1 %312 }
 0x158   : > { %v315_v55 = vsel %vm1365_vm11, %v311_v51, %v313_v53  ;;  %v316_v56 = vsel %vm1365_vm11, %v313_v53, %v311_v51  ;;  %v309_v62 = vmax.f32 %v295_v58, %v307_v54  ;;  %vm341_vm11 = vcmask 31744  }
 0x159   : > { %v317_v57 = vsel %vm1364_vm10, %v316_v56, -inf  ;;  %v325_v60 = vpop.permute.xlu0 %324  ;;  %vm345_vm10 = vcmask 1043456  }
 0x15a   : > { %v321_v59 = vcombine.low %v317_v57, %v315_v55 }
 0x15b   : > { %v327_v61 = vpop.permute.xlu1 %326 }
 0x15c   : > { %v329_v63 = vsel %vm328_vm14, %v325_v60, %v327_v61  ;;  %v330_v1 = vsel %vm328_vm14, %v327_v61, %v325_v60  ;;  %v323_v7 = vmax.f32 %v309_v62, %v321_v59 }
 0x15d   : > { %v331_v2 = vsel %vm218_vm15, %v330_v1, -inf }
 0x15e   : > { %v335_v8 = vcombine.low %v331_v2, %v329_v63 }
 0x160   : > { %v337_v9 = vmax.f32 %v323_v7, %v335_v8 }
 0x162   : > { %v340_v10 = vcombine.high %v337_v9, %v337_v9 }
 0x164   : > { %703 = vmatprep.subr.msk.mxu0 %vm345_vm10, %v340_v10 }
 0x165   : > { %704 = vmatpush1.msk.msra.mxu0 %vm345_vm10, %v337_v9 }
 0x166   : > { %705 = vmatmul.mubr.msk.f32.vlgmr.msra.gmra.mrb[0].mxu0 %vm341_vm11, %v338_v11 }
 0x239   : > { %v1209_v12 = vpop.f32.mrb[0].mxu0 }
 0x23a   : > { %428 = vrot.lane.b32.xlu0 %v1209_v12, %s920_s27  ;;  %v1213_v13 = vpop.f32.mrb[1].mxu0 }
 0x23b   : > { %v424_v14 = vcombine.low %v1209_v12, %v1213_v13  ;;  %430 = vrot.lane.b32.xlu1 %v1213_v13, %s920_s27 }
 0x23e   : > { %438 = vrot.lane.b32.xlu0 %v1209_v12, %s919_s17 }
 0x23f   : > { %440 = vrot.lane.b32.xlu1 %v1213_v13, %s919_s17 }
 0x242   : > { %448 = vrot.lane.b32.xlu0 %v1209_v12, %s921_s15 }
 0x243   : > { %450 = vrot.lane.b32.xlu1 %v1213_v13, %s921_s15 }
 0x246   : > { %458 = vrot.lane.b32.xlu0 %v1209_v12, %s922_s22 }
 0x247   : > { %460 = vrot.lane.b32.xlu1 %v1213_v13, %s922_s22 }
 0x2ac   : > { %v429_v15 = vpop.permute.xlu0 %428 }
 0x2ad   : > { %v431_v16 = vpop.permute.xlu1 %430 }
 0x2ae   : > { %v432_v17 = vsel %vm227_vm1, %v429_v15, %v431_v16  ;;  %v433_v18 = vsel %vm227_vm1, %v431_v16, %v429_v15  ;;  %vm1378_vm1 = vcmp.ge.s32.totalorder %v1119_v6, 2  ;;  %v509_v16 = vld [vmem:[#allocation5 + $0x4] sm:$0xf] }
 0x2af   : > { %v434_v23 = vsel %vm204_vm4, %v432_v17, -inf  ;;  %v435_v24 = vsel %vm205_vm5, %v433_v18, -inf  ;;  %vm1382_vm5 = vcmp.lt.s32.totalorder %v1110_v3, 16 }
 0x2b0   : > { %v439_v19 = vpop.permute.xlu0 %438  ;;  %v436_v29 = vmax.f32 %v1209_v12, %v434_v23  ;;  %v437_v30 = vmax.f32 %v1213_v13, %v435_v24 }
 0x2b1   : > { %v441_v20 = vpop.permute.xlu1 %440 }
 0x2b2   : > { %v442_v21 = vsel %vm241_vm0, %v439_v19, %v441_v20  ;;  %v443_v22 = vsel %vm241_vm0, %v441_v20, %v439_v19  ;;  %vm1377_vm0 = vcmp.ge.s32.totalorder %v1116_v5, 2 }
 0x2b3   : > { %v444_v26 = vsel %vm206_vm2, %v442_v21, -inf  ;;  %v445_v27 = vsel %vm207_vm3, %v443_v22, -inf  ;;  %vm1379_vm2 = vcmp.lt.s32.totalorder %v1110_v3, 96  ;;  %vm1380_vm3 = vcmp.lt.s32.totalorder %v1113_v4, 224 }
 0x2b4   : > { %v449_v25 = vpop.permute.xlu0 %448  ;;  %v446_v35 = vmax.f32 %v436_v29, %v444_v26  ;;  %v447_v36 = vmax.f32 %v437_v30, %v445_v27  ;;  %vm1381_vm4 = vmmov %vm1379_vm2 }
 0x2b5   : > { %v451_v28 = vpop.permute.xlu1 %450 }
 0x2b6   : > { %v452_v31 = vsel %vm255_vm6, %v449_v25, %v451_v28  ;;  %v453_v32 = vsel %vm255_vm6, %v451_v28, %v449_v25  ;;  %vm1383_vm6 = vmmov %vm1382_vm5 }
 0x2b7   : > { %v454_v33 = vsel %vm208_vm7, %v453_v32, -inf  ;;  %v455_v34 = vsel %vm209_vm8, %v452_v31, -inf  ;;  %vm1384_vm7 = vcmp.ge.s32.totalorder %v1110_v3, 16  ;;  %v426_v3 = vadd.f32 %v424_v14, %v1094_v0 }
 0x2b8   : > { %v459_v37 = vpop.permute.xlu0 %458  ;;  %v456_v39 = vmax.f32 %v446_v35, %v454_v33  ;;  %v457_v40 = vmax.f32 %v447_v36, %v455_v34 }
 0x2b9   : > { %v461_v38 = vpop.permute.xlu1 %460 }
 0x2ba   : > { %v462_v41 = vsel %vm269_vm9, %v459_v37, %v461_v38  ;;  %v463_v42 = vsel %vm269_vm9, %v461_v38, %v459_v37 }
 0x2bb   : > { %v464_v43 = vsel %vm1377_vm0, %v463_v42, -inf  ;;  %v465_v44 = vsel %vm1378_vm1, %v462_v41, -inf }
 0x2bc   : > { %v466_v45 = vmax.f32 %v456_v39, %v464_v43  ;;  %v467_v46 = vmax.f32 %v457_v40, %v465_v44 }
 0x2be   : > { %468 = vrot.lane.b32.xlu0 %v466_v45, %s923_s23  ;;  %470 = vrot.lane.b32.xlu1 %v467_v46, %s923_s23 }
 0x2c2   : > { %478 = vrot.lane.b32.xlu0 %v466_v45, %s924_s28  ;;  %480 = vrot.lane.b32.xlu1 %v467_v46, %s924_s28 }
 0x2c6   : > { %488 = vrot.lane.b32.xlu0 %v466_v45, %s925_s30  ;;  %490 = vrot.lane.b32.xlu1 %v467_v46, %s925_s30 }
 0x2ca   : > { %498 = vrot.lane.b32.xlu0 %v466_v45, %s927_s3  ;;  %500 = vrot.lane.b32.xlu1 %v467_v46, %s927_s3 }
 0x330   : > { %v469_v5 = vpop.permute.xlu0 %468  ;;  %v471_v6 = vpop.permute.xlu1 %470 }
 0x331   : > { %v473_v47 = vsel %vm286_vm12, %v471_v6, %v469_v5  ;;  %v472_v52 = vsel %vm286_vm12, %v469_v5, %v471_v6 }
 0x332   : > { %v475_v48 = vsel %vm213_vm13, %v473_v47, -inf  ;;  %v476_v59 = vmax.f32 %v466_v45, %v472_v52 }
 0x333   : > { %v477_v53 = vmax.f32 %v467_v46, %v475_v48 }
 0x334   : > { %v479_v49 = vpop.permute.xlu0 %478  ;;  %v481_v50 = vpop.permute.xlu1 %480 }
 0x335   : > { %v483_v51 = vsel %vm1379_vm2, %v481_v50, %v479_v49  ;;  %v482_v55 = vsel %vm1381_vm4, %v479_v49, %v481_v50 }
 0x336   : > { %v485_v54 = vsel %vm1380_vm3, %v483_v51, -inf  ;;  %v486_v63 = vmax.f32 %v476_v59, %v482_v55 }
 0x337   : > { %v487_v56 = vmax.f32 %v477_v53, %v485_v54 }
 0x338   : > { %v489_v57 = vpop.permute.xlu0 %488  ;;  %v491_v58 = vpop.permute.xlu1 %490 }
 0x339   : > { %v492_v60 = vsel %vm1382_vm5, %v489_v57, %v491_v58  ;;  %v493_v61 = vsel %vm1383_vm6, %v491_v58, %v489_v57 }
 0x33a   : > { %v494_v62 = vsel %vm1384_vm7, %v493_v61, -inf  ;;  %v497_v4 = vmax.f32 %v487_v56, %v492_v60 }
 0x33b   : > { %v496_v7 = vmax.f32 %v486_v63, %v494_v62 }
 0x33c   : > { %v499_v1 = vpop.permute.xlu0 %498  ;;  %v501_v2 = vpop.permute.xlu1 %500 }
 0x33d   : > { %v502_v8 = vsel %vm328_vm14, %v499_v1, %v501_v2  ;;  %v503_v9 = vsel %vm328_vm14, %v501_v2, %v499_v1 }
 0x33e   : > { %v504_v10 = vsel %vm218_vm15, %v503_v9, -inf  ;;  %v507_v11 = vmax.f32 %v497_v4, %v502_v8 }
 0x33f   : > { %v506_v15 = vmax.f32 %v496_v7, %v504_v10 }
 0x340   : > { %706 = vmatprep.subr.msk.mxu1 %vm345_vm10, %v507_v11 }
 0x341   : > { %707 = vmatpush1.msk.msra.mxu1 %vm345_vm10, %v506_v15 }
 0x342   : > { %708 = vmatmul.mubr.msk.f32.vlgmr.msra.gmra.mrb[0].mxu1 %vm341_vm11, %v509_v16 }
 0x415   : > { %v585_v17 = vpop.f32.mrb[0].mxu1 }
 0x416   : > { %v587_v18 = vpop.f32.mrb[1].mxu1 }
 0x417   : > { %v593_v19 = vcombine.low %v585_v17, %v587_v18 }
 0x419   : > { %v595_v20 = vadd.f32 %v593_v19, %v426_v3 }
 0x41b   : > { %596 = vst [vmem:[%s174_s5] sm:$0xff] %v595_v20 }
 0x41c   : > { %856 = shalt.err (!%p853_p7)
}
 0x41d   : > { %s857_s20 = scalar_lea.hbm %s1310_s24, 128  ;;  %s861_s15 = scalar_lea.hbm %s1356_s2, 256 }
 0x41e   : > { %p858_p9 = scmp.ne.s32.totalorder %s1310_s24, %s857_s20  ;;  %p862_p0 = scmp.lt.u32.totalorder %s1310_s24, %s1356_s2 }
 0x41f   : > { %p863_p11 = scmp.lt.u32.totalorder %s861_s15, %s857_s20  ;;  %p865_p4 = scmp.lt.u32.totalorder %s857_s20, %s1310_s24 }
 0x420   : > { %p859_p2 = pnand %p858_p9, %p1035_p12 }
 0x421   : > { %p864_p1 = por %p863_p11, %p862_p0 }
 0x422   : > { %p860_p5 = pneg %p859_p2 }
 0x423   : > { %p866_p6 = por %p865_p4, %p864_p1 }
 0x425   : > { %p867_p8 = pnand %p866_p6, %p860_p5 }
 0x427   : > { %870 = shalt.err (!%p867_p8)
}
 0x428   : > { %722 = dma.vmem_to_hbm [thread:$0]  (%p1035_p12), %s1312_s6, 128, %s1310_s24, %s598_s13  }
 0x429 PF: > { %s624_s28 = sand.u32 1, %s901_s9   ;;  %p1385_p10 = scmp.ne.s32.totalorder %s1367_s16, 0 }
 0x42a   : > { %p1386_p13 = scmp.ge.s32.totalorder %s913_s12, 2  ;;  %s625_s30 = scalar_lea.sflag [#allocation4], %s624_s28 }
 0x42c   : > { %p733_p3 = pnand %p1386_p13, %p1385_p10 }
 0x42e   : > { %896 = dma.done.wait (!%p733_p3), %s625_s30, 128  }
 0x42f   : > { %898 = vsyncadd (!%p733_p3), %s625_s30, 4294967168  ;;  %p16_p7 = scmp.ge.s32.totalorder %s1000_s21, 4   ;;  %s1387_s9 = smov %s905_s10 }
 0x430   : > { %s1388_s10 = smov %s909_s11  ;;  %s1389_s11 = smov %s1031_s8 }
 0x431   : > { %s1390_s12 = smov %s1000_s21  ;;  %18 = sbr.rel (!%p16_p7) target bundleno = 6 (0x6), region = 78 }
 0x438   :  { %630 = vsyncpa [#allocation3], 1 }
 0x439   :  { %632 = vsyncpa [#allocation3 + $0x1], 1 }
 0x43a   :  { %633 = vsyncpa [#allocation6], 1 }
 0x43b   :  { %634 = vsyncpa [#allocation4], 1 }
 0x43c   :  { %636 = vsyncpa [#allocation4 + $0x1], 1 }

</bundles_post_ra>
